<compile_context>
chip_gen: v7x
topology: tpu7x:2x2x1
jax: 0.10.0
libtpu: 0.0.40
codegen_flags: <defaults>
</compile_context>

<pallas_src>
import functools
import math

import jax
import jax.numpy as jnp
from jax import lax
from jax.experimental import pallas as pl
from jax.experimental.pallas import tpu as pltpu

_LOG2E = math.log2(math.e)


def _flash_qkv_kernel(q_ref, k_ref, v_ref, o_ref,
                      m_ref, l_ref, acc_ref, qt_ref, *,
                      qk_scale, kv_tile, valid_len, exp_dtype, recip_approx):
    # q_ref: [hb, C, tq]   k_ref / v_ref: [hb, C, tk]   o_ref: [hb, C, tq]
    # m_ref / l_ref: [hb, tq, 1] f32   acc_ref: [hb, tq, C] f32
    # qt_ref: [hb, tq, C] input-dtype (pre-scaled, pre-transposed q)
    kv_idx = pl.program_id(2)
    hb = q_ref.shape[0]

    @pl.when(kv_idx == 0)
    def _init():
        m_ref[...] = jnp.full_like(m_ref, -jnp.inf)
        l_ref[...] = jnp.zeros_like(l_ref)
        acc_ref[...] = jnp.zeros_like(acc_ref)
        # Hoist kv-invariant q work: scale (both ch**-0.25 factors + log2(e)
        # folded into one scalar) and transpose, once per (batch, q-tile).
        for h in range(hb):
            qt_ref[h] = (q_ref[h].astype(jnp.float32).T * qk_scale).astype(qt_ref.dtype)

    k = k_ref[...]                                            # [hb, C, tk]
    v = v_ref[...]                                            # [hb, C, tk]

    # s[h, t, s'] = log2(e) * scale * sum_c q[h, c, t] * k[h, c, s']
    # (scores already in the log2 domain; exp2 below yields softmax weights).
    s = jnp.einsum('hqc,hck->hqk', qt_ref[...], k,
                   preferred_element_type=jnp.float32)        # [hb, tq, tk] f32

    if valid_len is not None:
        # Mask kv columns that are sequence padding.
        col = kv_idx * kv_tile + lax.broadcasted_iota(jnp.int32, s.shape, 2)
        s = jnp.where(col < valid_len, s, -jnp.inf)

    # Online softmax (unnormalized; normalization deferred to the epilogue).
    m_prev = m_ref[...]                                       # [hb, tq, 1]
    m_new = jnp.maximum(m_prev, jnp.max(s, axis=-1, keepdims=True))
    alpha = jnp.exp2(m_prev - m_new)                          # [hb, tq, 1] f32
    # exp2 in bf16 for bf16 inputs on v6e/v7x (2x EUP rate, p lands directly in
    # the MXU dtype); f32 elsewhere.
    p = jnp.exp2((s - m_new).astype(exp_dtype))               # [hb, tq, tk]
    l_ref[...] = alpha * l_ref[...] + jnp.sum(
        p.astype(jnp.float32), axis=-1, keepdims=True)

    # acc[h, t, c] += sum_s p[h, t, s] * v[h, c, s]  (MXU trans_b form; no
    # transpose of the big p tile).
    pv = jnp.einsum('hqk,hck->hqc', p.astype(v.dtype), v,
                    preferred_element_type=jnp.float32)       # [hb, tq, C]
    acc_ref[...] = alpha * acc_ref[...] + pv
    m_ref[...] = m_new

    @pl.when(kv_idx == pl.num_programs(2) - 1)
    def _finalize():
        if recip_approx:
            out = acc_ref[...] * pl.reciprocal(l_ref[...], approx=True)
        else:
            out = acc_ref[...] / l_ref[...]                   # exact for f32 callers
        # Only the small [tq, C] per-head tile is transposed, once per q tile,
        # so T stays the lane axis of the output store (lane-dense vst).
        for h in range(hb):
            o_ref[h] = out[h].T.astype(o_ref.dtype)


def _round_up(x, m):
    return (x + m - 1) // m * m


def _choose_div(total, preferred):
    """Largest multiple-of-128 divisor of `total` <= preferred (total is either
    <= preferred, or a multiple of 128 so 128 always divides it)."""
    if total <= preferred:
        return total
    t = (preferred // 128) * 128
    while t >= 128:
        if total % t == 0:
            return t
        t -= 128
    return 128


def _pick_head_block(batch):
    """Heads per grid step when T fits one tile; keep >= 2 grid blocks for the
    v7x dual TensorCores."""
    cap = max(1, min(8, batch // 2))
    for hb in (8, 4, 2, 1):
        if hb <= cap and batch % hb == 0:
            return hb
    return 1


def _use_bf16_exp(dtype):
    if dtype != jnp.bfloat16:
        return False
    try:
        kind = jax.devices()[0].device_kind.lower()
    except Exception:
        return True
    return "v5" not in kind   # v5e/v5p have no bf16 EUP: keep f32 exponentials


def qkv_attention_legacy(qkv, n_heads, *, q_tile=1024, kv_tile=1024):
    """Pallas equivalent of QKVAttentionLegacy.forward.

    :param qkv: [N, H*3*C, T] array.
    :return:    [N, H*C, T] array.
    """
    bs, width, length = qkv.shape
    assert width % (3 * n_heads) == 0
    ch = width // (3 * n_heads)
    itemsize = jnp.dtype(qkv.dtype).itemsize
    # Second-minor block dim (ch) tiling constraint: 8 for f32, 16 for bf16.
    min_ch = max(8, 32 // itemsize)
    assert ch % min_ch == 0, (
        f"per-head channels ({ch}) must be a multiple of {min_ch} for {qkv.dtype}")
    # TODO(synk): ch not a multiple of the above would need channel padding; all
    # real UNet configs (ch = 32/64/...) satisfy it.

    B = bs * n_heads
    qk_scale = _LOG2E / math.sqrt(ch)   # (1/ch**0.25)**2 * log2(e), folded onto q

    # Tile selection: full axis when it fits one tile; otherwise pad T to a
    # multiple of 128 and pick the largest multiple-of-128 divisors <= preferred.
    if length <= q_tile and length <= kv_tile:
        t_pad, tq, tk = length, length, length
    else:
        t_pad = _round_up(length, 128)
        tq = _choose_div(t_pad, q_tile)
        tk = _choose_div(t_pad, kv_tile)
    num_q = t_pad // tq
    num_kv = t_pad // tk
    valid_len = length if t_pad != length else None

    # Batch heads per grid step when the whole sequence fits one (small) tile.
    hb = _pick_head_block(B) if (num_q == 1 and num_kv == 1 and tq <= 256) else 1

    x = qkv.reshape(B, 3 * ch, length)  # layout glue only
    if valid_len is not None:
        x = jnp.pad(x, ((0, 0), (0, 0), (0, t_pad - length)))

    exp_dtype = jnp.bfloat16 if _use_bf16_exp(qkv.dtype) else jnp.float32
    recip_approx = qkv.dtype == jnp.bfloat16

    # Explicit VMEM budget: defaults are 16 MiB (v5e) / 32 MiB (v6e, v7x); cap
    # at 48 MiB to stay safely inside v7x's 64 MiB physical VMEM.
    est = (2 * hb * ch * (2 * tq + 2 * tk) * itemsize          # q,k,v,out double-buffers
           + hb * tq * (8 + 4 * ch + itemsize * ch)            # m, l, acc, qt scratch
           + 2 * hb * tq * tk * 4)                             # s / p f32 temporaries
    vmem_limit = int(min(max(2 * est, 32 * 1024 * 1024), 48 * 1024 * 1024))

    kernel = functools.partial(
        _flash_qkv_kernel, qk_scale=qk_scale, kv_tile=tk, valid_len=valid_len,
        exp_dtype=exp_dtype, recip_approx=recip_approx)

    out = pl.pallas_call(
        kernel,
        out_shape=jax.ShapeDtypeStruct((B, ch, t_pad), qkv.dtype),
        grid=(B // hb, num_q, num_kv),
        in_specs=[
            # Same array passed 3x; channel-block index 0/1/2 selects Q/K/V.
            pl.BlockSpec((hb, ch, tq), lambda b, i, j: (b, 0, i)),  # Q: [0, C)
            pl.BlockSpec((hb, ch, tk), lambda b, i, j: (b, 1, j)),  # K: [C, 2C)
            pl.BlockSpec((hb, ch, tk), lambda b, i, j: (b, 2, j)),  # V: [2C, 3C)
        ],
        out_specs=pl.BlockSpec((hb, ch, tq), lambda b, i, j: (b, 0, i)),
        scratch_shapes=[
            pltpu.VMEM((hb, tq, 1), jnp.float32),    # running max (log2 domain)
            pltpu.VMEM((hb, tq, 1), jnp.float32),    # running sum
            pltpu.VMEM((hb, tq, ch), jnp.float32),   # output accumulator (q-major)
            pltpu.VMEM((hb, tq, ch), qkv.dtype),     # pre-scaled / transposed q
        ],
        compiler_params=pltpu.CompilerParams(
            dimension_semantics=("parallel", "parallel", "arbitrary"),
            vmem_limit_bytes=vmem_limit),
    )(x, x, x)

    if valid_len is not None:
        out = out[:, :, :length]
    return out.reshape(bs, n_heads * ch, length)


def _reference(qkv, n_heads):
    # Pure-JAX reference mirroring the PyTorch module exactly.
    bs, width, length = qkv.shape
    ch = width // (3 * n_heads)
    x = qkv.reshape(bs * n_heads, 3 * ch, length)
    q, k, v = x[:, :ch], x[:, ch:2 * ch], x[:, 2 * ch:]
    scale = 1.0 / math.sqrt(math.sqrt(ch))
    w = jnp.einsum('bct,bcs->bts', q * scale, k * scale)
    w = jax.nn.softmax(w.astype(jnp.float32), axis=-1).astype(w.dtype)
    a = jnp.einsum('bts,bcs->bct', w, v)
    return a.reshape(bs, -1, length)


if __name__ == "__main__":
    key = jax.random.PRNGKey(0)
    k1, k2, k3, k4 = jax.random.split(key, 4)

    # Case 1: small shapes, single tile, head batching (hb=2).
    n_heads, N, C, T = 2, 2, 8, 16                 # qkv width = H*3*C = 48
    qkv = jax.random.normal(k1, (N, n_heads * 3 * C, T), dtype=jnp.float32)
    out = jax.block_until_ready(qkv_attention_legacy(qkv, n_heads))
    ref = _reference(qkv, n_heads)
    assert out.shape == (N, n_heads * C, T)
    assert jnp.allclose(out, ref, atol=5e-3, rtol=5e-3), \
        float(jnp.max(jnp.abs(out - ref)))

    # Case 2: tiled online-softmax reduction (2 q tiles x 2 kv tiles).
    n_heads2, N2, C2, T2 = 2, 1, 8, 256
    qkv2 = jax.random.normal(k2, (N2, n_heads2 * 3 * C2, T2), dtype=jnp.float32)
    out2 = jax.block_until_ready(
        qkv_attention_legacy(qkv2, n_heads2, q_tile=128, kv_tile=128))
    ref2 = _reference(qkv2, n_heads2)
    assert out2.shape == (N2, n_heads2 * C2, T2)
    assert jnp.allclose(out2, ref2, atol=5e-3, rtol=5e-3), \
        float(jnp.max(jnp.abs(out2 - ref2)))

    # Case 3: non-128-divisible T > tile -> padded + masked kv columns.
    n_heads3, N3, C3, T3 = 1, 1, 16, 200
    qkv3 = jax.random.normal(k3, (N3, n_heads3 * 3 * C3, T3), dtype=jnp.float32)
    out3 = jax.block_until_ready(
        qkv_attention_legacy(qkv3, n_heads3, q_tile=128, kv_tile=128))
    ref3 = _reference(qkv3, n_heads3)
    assert out3.shape == (N3, n_heads3 * C3, T3)
    assert jnp.allclose(out3, ref3, atol=5e-3, rtol=5e-3), \
        float(jnp.max(jnp.abs(out3 - ref3)))

    # Case 4: bf16 inputs (bf16 exponentials on v6e/v7x, f32 on v5e).
    n_heads4, N4, C4, T4 = 2, 1, 32, 128
    qkv4 = jax.random.normal(k4, (N4, n_heads4 * 3 * C4, T4)).astype(jnp.bfloat16)
    out4 = jax.block_until_ready(qkv_attention_legacy(qkv4, n_heads4))
    ref4 = _reference(qkv4, n_heads4)
    assert out4.shape == (N4, n_heads4 * C4, T4)
    assert jnp.allclose(out4.astype(jnp.float32), ref4.astype(jnp.float32),
                        atol=5e-2, rtol=5e-2), \
        float(jnp.max(jnp.abs(out4.astype(jnp.float32) - ref4.astype(jnp.float32))))

    print("KERNEL_OK")
</pallas_src>

<mosaic_0001>
module attributes {stable_mosaic.version = 11 : i64} {
  func.func @_flash_qkv_kernel(%arg0: i32, %arg1: i32, %arg2: i32, %arg3: memref<2x8x16xf32, #tpu.memory_space<vmem>>, %arg4: memref<2x8x16xf32, #tpu.memory_space<vmem>>, %arg5: memref<2x8x16xf32, #tpu.memory_space<vmem>>, %arg6: memref<2x8x16xf32, #tpu.memory_space<vmem>>, %arg7: memref<2x16x1xf32, #tpu.memory_space<vmem>>, %arg8: memref<2x16x1xf32, #tpu.memory_space<vmem>>, %arg9: memref<2x16x8xf32, #tpu.memory_space<vmem>>, %arg10: memref<2x16x8xf32, #tpu.memory_space<vmem>>) attributes {dimension_semantics = [#tpu.dimension_semantics<parallel>, #tpu.dimension_semantics<parallel>, #tpu.dimension_semantics<arbitrary>], iteration_bounds = array<i64: 2, 1, 1>, scalar_prefetch = 0 : i64, scratch_operands = 4 : i64, tpu.core_type = #tpu.core_type<tc>, window_params = [{transform_indices = @transform_0, window_bounds = array<i64: 2, 8, 16>}, {transform_indices = @transform_1, window_bounds = array<i64: 2, 8, 16>}, {transform_indices = @transform_2, window_bounds = array<i64: 2, 8, 16>}, {transform_indices = @transform_3, window_bounds = array<i64: 2, 8, 16>}]} {
    %c0_i32 = arith.constant 0 : i32
    %0 = arith.cmpi eq, %arg2, %c0_i32 : i32
    %1 = arith.extui %0 : i1 to i32
    %c0_i32_0 = arith.constant 0 : i32
    %2 = arith.cmpi ne, %1, %c0_i32_0 : i32
    scf.if %2 {
      %cst_32 = arith.constant 0xFF800000 : f32
      %32 = vector.broadcast %cst_32 : f32 to vector<2x16x1xf32>
      %c0_33 = arith.constant 0 : index
      %c0_34 = arith.constant 0 : index
      %c0_35 = arith.constant 0 : index
      %33 = vector.load %arg7[%c0_33, %c0_34, %c0_35] : memref<2x16x1xf32, #tpu.memory_space<vmem>>, vector<2x16x1xf32>
      tpu.vector_store %arg7[%c0_33, %c0_34, %c0_35], %32 {strides = array<i32>} : memref<2x16x1xf32, #tpu.memory_space<vmem>>, vector<2x16x1xf32>,
      %cst_36 = arith.constant 0.000000e+00 : f32
      %34 = vector.broadcast %cst_36 : f32 to vector<2x16x1xf32>
      %c0_37 = arith.constant 0 : index
      %c0_38 = arith.constant 0 : index
      %c0_39 = arith.constant 0 : index
      %35 = vector.load %arg8[%c0_37, %c0_38, %c0_39] : memref<2x16x1xf32, #tpu.memory_space<vmem>>, vector<2x16x1xf32>
      tpu.vector_store %arg8[%c0_37, %c0_38, %c0_39], %34 {strides = array<i32>} : memref<2x16x1xf32, #tpu.memory_space<vmem>>, vector<2x16x1xf32>,
      %cst_40 = arith.constant 0.000000e+00 : f32
      %36 = vector.broadcast %cst_40 : f32 to vector<2x16x8xf32>
      %c0_41 = arith.constant 0 : index
      %c0_42 = arith.constant 0 : index
      %c0_43 = arith.constant 0 : index
      %37 = vector.load %arg9[%c0_41, %c0_42, %c0_43] : memref<2x16x8xf32, #tpu.memory_space<vmem>>, vector<2x16x8xf32>
      tpu.vector_store %arg9[%c0_41, %c0_42, %c0_43], %36 {strides = array<i32>} : memref<2x16x8xf32, #tpu.memory_space<vmem>>, vector<2x16x8xf32>,
      %c0_44 = arith.constant 0 : index
      %c0_45 = arith.constant 0 : index
      %c0_46 = arith.constant 0 : index
      %38 = vector.load %arg3[%c0_44, %c0_45, %c0_46] : memref<2x8x16xf32, #tpu.memory_space<vmem>>, vector<1x8x16xf32>
      %39 = vector.shape_cast %38 : vector<1x8x16xf32> to vector<8x16xf32>
      %40 = tpu.transpose %39, [1, 0] : vector<8x16xf32> -> vector<16x8xf32>
      %cst_47 = arith.constant 0.510069728 : f32
      %41 = vector.broadcast %cst_47 : f32 to vector<16x8xf32>
      %42 = arith.mulf %40, %41 : vector<16x8xf32>
      %c0_48 = arith.constant 0 : index
      %c0_49 = arith.constant 0 : index
      %c0_50 = arith.constant 0 : index
      %43 = vector.load %arg10[%c0_48, %c0_49, %c0_50] : memref<2x16x8xf32, #tpu.memory_space<vmem>>, vector<1x16x8xf32>
      %44 = vector.shape_cast %43 : vector<1x16x8xf32> to vector<16x8xf32>
      %45 = vector.shape_cast %42 : vector<16x8xf32> to vector<1x16x8xf32>
      tpu.vector_store %arg10[%c0_48, %c0_49, %c0_50], %45 {strides = array<i32>} : memref<2x16x8xf32, #tpu.memory_space<vmem>>, vector<1x16x8xf32>,
      %c1 = arith.constant 1 : index
      %c0_51 = arith.constant 0 : index
      %c0_52 = arith.constant 0 : index
      %46 = vector.load %arg3[%c1, %c0_51, %c0_52] : memref<2x8x16xf32, #tpu.memory_space<vmem>>, vector<1x8x16xf32>
      %47 = vector.shape_cast %46 : vector<1x8x16xf32> to vector<8x16xf32>
      %48 = tpu.transpose %47, [1, 0] : vector<8x16xf32> -> vector<16x8xf32>
      %cst_53 = arith.constant 0.510069728 : f32
      %49 = vector.broadcast %cst_53 : f32 to vector<16x8xf32>
      %50 = arith.mulf %48, %49 : vector<16x8xf32>
      %c1_54 = arith.constant 1 : index
      %c0_55 = arith.constant 0 : index
      %c0_56 = arith.constant 0 : index
      %51 = vector.load %arg10[%c1_54, %c0_55, %c0_56] : memref<2x16x8xf32, #tpu.memory_space<vmem>>, vector<1x16x8xf32>
      %52 = vector.shape_cast %51 : vector<1x16x8xf32> to vector<16x8xf32>
      %53 = vector.shape_cast %50 : vector<16x8xf32> to vector<1x16x8xf32>
      tpu.vector_store %arg10[%c1_54, %c0_55, %c0_56], %53 {strides = array<i32>} : memref<2x16x8xf32, #tpu.memory_space<vmem>>, vector<1x16x8xf32>,
    } else {
    }
    %c0 = arith.constant 0 : index
    %c0_1 = arith.constant 0 : index
    %c0_2 = arith.constant 0 : index
    %3 = vector.load %arg4[%c0, %c0_1, %c0_2] : memref<2x8x16xf32, #tpu.memory_space<vmem>>, vector<2x8x16xf32>
    %c0_3 = arith.constant 0 : index
    %c0_4 = arith.constant 0 : index
    %c0_5 = arith.constant 0 : index
    %4 = vector.load %arg5[%c0_3, %c0_4, %c0_5] : memref<2x8x16xf32, #tpu.memory_space<vmem>>, vector<2x8x16xf32>
    %c0_6 = arith.constant 0 : index
    %c0_7 = arith.constant 0 : index
    %c0_8 = arith.constant 0 : index
    %5 = vector.load %arg10[%c0_6, %c0_7, %c0_8] : memref<2x16x8xf32, #tpu.memory_space<vmem>>, vector<2x16x8xf32>
    "tpu.trace_start"() <{level = 10 : i32, message = "hqc,hck->hqk"}> : () -> ()
    %cst = arith.constant dense<0.000000e+00> : vector<2x16x16xf32>
    %6 = tpu.matmul %5, %3, %cst {dimension_numbers = #tpu.dot_dimension_numbers<[2], [1], [1], [2], [0, 0, 0, 1, 1, 2], [0], [0]>} : vector<2x16x8xf32>, vector<2x8x16xf32>, vector<2x16x16xf32> -> vector<2x16x16xf32>
    "tpu.trace_stop"() : () -> ()
    %c0_9 = arith.constant 0 : index
    %c0_10 = arith.constant 0 : index
    %c0_11 = arith.constant 0 : index
    %7 = vector.load %arg7[%c0_9, %c0_10, %c0_11] : memref<2x16x1xf32, #tpu.memory_space<vmem>>, vector<2x16x1xf32>
    %cst_12 = arith.constant dense<0xFF800000> : vector<2x16xf32>
    %8 = vector.multi_reduction <maximumf>, %6, %cst_12 [2] : vector<2x16x16xf32> to vector<2x16xf32>
    %9 = vector.shape_cast %8 : vector<2x16xf32> to vector<2x16x1xf32>
    %10 = arith.maximumf %7, %9 : vector<2x16x1xf32>
    %11 = arith.subf %7, %10 : vector<2x16x1xf32>
    %12 = math.exp2 %11 : vector<2x16x1xf32>
    %13 = vector.broadcast %10 : vector<2x16x1xf32> to vector<2x16x16xf32>
    %14 = arith.subf %6, %13 : vector<2x16x16xf32>
    %15 = math.exp2 %14 : vector<2x16x16xf32>
    %c0_13 = arith.constant 0 : index
    %c0_14 = arith.constant 0 : index
    %c0_15 = arith.constant 0 : index
    %16 = vector.load %arg8[%c0_13, %c0_14, %c0_15] : memref<2x16x1xf32, #tpu.memory_space<vmem>>, vector<2x16x1xf32>
    %17 = arith.mulf %12, %16 : vector<2x16x1xf32>
    %cst_16 = arith.constant dense<0.000000e+00> : vector<2x16xf32>
    %18 = vector.multi_reduction <add>, %15, %cst_16 [2] : vector<2x16x16xf32> to vector<2x16xf32>
    %19 = vector.shape_cast %18 : vector<2x16xf32> to vector<2x16x1xf32>
    %20 = arith.addf %17, %19 : vector<2x16x1xf32>
    %c0_17 = arith.constant 0 : index
    %c0_18 = arith.constant 0 : index
    %c0_19 = arith.constant 0 : index
    %21 = vector.load %arg8[%c0_17, %c0_18, %c0_19] : memref<2x16x1xf32, #tpu.memory_space<vmem>>, vector<2x16x1xf32>
    tpu.vector_store %arg8[%c0_17, %c0_18, %c0_19], %20 {strides = array<i32>} : memref<2x16x1xf32, #tpu.memory_space<vmem>>, vector<2x16x1xf32>,
    "tpu.trace_start"() <{level = 10 : i32, message = "hqk,hck->hqc"}> : () -> ()
    %cst_20 = arith.constant dense<0.000000e+00> : vector<2x16x8xf32>
    %22 = tpu.matmul %15, %4, %cst_20 {dimension_numbers = #tpu.dot_dimension_numbers<[2], [2], [1], [1], [0, 0, 0, 1, 1, 1], [0], [0]>} : vector<2x16x16xf32>, vector<2x8x16xf32>, vector<2x16x8xf32> -> vector<2x16x8xf32>
    "tpu.trace_stop"() : () -> ()
    %c0_21 = arith.constant 0 : index
    %c0_22 = arith.constant 0 : index
    %c0_23 = arith.constant 0 : index
    %23 = vector.load %arg9[%c0_21, %c0_22, %c0_23] : memref<2x16x8xf32, #tpu.memory_space<vmem>>, vector<2x16x8xf32>
    %24 = vector.broadcast %12 : vector<2x16x1xf32> to vector<2x16x8xf32>
    %25 = arith.mulf %24, %23 : vector<2x16x8xf32>
    %26 = arith.addf %25, %22 : vector<2x16x8xf32>
    %c0_24 = arith.constant 0 : index
    %c0_25 = arith.constant 0 : index
    %c0_26 = arith.constant 0 : index
    %27 = vector.load %arg9[%c0_24, %c0_25, %c0_26] : memref<2x16x8xf32, #tpu.memory_space<vmem>>, vector<2x16x8xf32>
    tpu.vector_store %arg9[%c0_24, %c0_25, %c0_26], %26 {strides = array<i32>} : memref<2x16x8xf32, #tpu.memory_space<vmem>>, vector<2x16x8xf32>,
    %c0_27 = arith.constant 0 : index
    %c0_28 = arith.constant 0 : index
    %c0_29 = arith.constant 0 : index
    %28 = vector.load %arg7[%c0_27, %c0_28, %c0_29] : memref<2x16x1xf32, #tpu.memory_space<vmem>>, vector<2x16x1xf32>
    tpu.vector_store %arg7[%c0_27, %c0_28, %c0_29], %10 {strides = array<i32>} : memref<2x16x1xf32, #tpu.memory_space<vmem>>, vector<2x16x1xf32>,
    %c0_i32_30 = arith.constant 0 : i32
    %29 = arith.cmpi eq, %arg2, %c0_i32_30 : i32
    %30 = arith.extui %29 : i1 to i32
    %c0_i32_31 = arith.constant 0 : i32
    %31 = arith.cmpi ne, %30, %c0_i32_31 : i32
    scf.if %31 {
      %c0_32 = arith.constant 0 : index
      %c0_33 = arith.constant 0 : index
      %c0_34 = arith.constant 0 : index
      %32 = vector.load %arg9[%c0_32, %c0_33, %c0_34] : memref<2x16x8xf32, #tpu.memory_space<vmem>>, vector<2x16x8xf32>
      %c0_35 = arith.constant 0 : index
      %c0_36 = arith.constant 0 : index
      %c0_37 = arith.constant 0 : index
      %33 = vector.load %arg8[%c0_35, %c0_36, %c0_37] : memref<2x16x1xf32, #tpu.memory_space<vmem>>, vector<2x16x1xf32>
      %34 = vector.broadcast %33 : vector<2x16x1xf32> to vector<2x16x8xf32>
      %35 = arith.divf %32, %34 : vector<2x16x8xf32>
      %36 = vector.extract_strided_slice %35 {offsets = [0, 0, 0], sizes = [1, 16, 8], strides = [1, 1, 1]} : vector<2x16x8xf32> to vector<1x16x8xf32>
      %37 = vector.shape_cast %36 : vector<1x16x8xf32> to vector<16x8xf32>
      %38 = tpu.transpose %37, [1, 0] : vector<16x8xf32> -> vector<8x16xf32>
      %c0_38 = arith.constant 0 : index
      %c0_39 = arith.constant 0 : index
      %c0_40 = arith.constant 0 : index
      %39 = vector.load %arg6[%c0_38, %c0_39, %c0_40] : memref<2x8x16xf32, #tpu.memory_space<vmem>>, vector<1x8x16xf32>
      %40 = vector.shape_cast %39 : vector<1x8x16xf32> to vector<8x16xf32>
      %41 = vector.shape_cast %38 : vector<8x16xf32> to vector<1x8x16xf32>
      tpu.vector_store %arg6[%c0_38, %c0_39, %c0_40], %41 {strides = array<i32>} : memref<2x8x16xf32, #tpu.memory_space<vmem>>, vector<1x8x16xf32>,
      %42 = vector.extract_strided_slice %35 {offsets = [1, 0, 0], sizes = [1, 16, 8], strides = [1, 1, 1]} : vector<2x16x8xf32> to vector<1x16x8xf32>
      %43 = vector.shape_cast %42 : vector<1x16x8xf32> to vector<16x8xf32>
      %44 = tpu.transpose %43, [1, 0] : vector<16x8xf32> -> vector<8x16xf32>
      %c1 = arith.constant 1 : index
      %c0_41 = arith.constant 0 : index
      %c0_42 = arith.constant 0 : index
      %45 = vector.load %arg6[%c1, %c0_41, %c0_42] : memref<2x8x16xf32, #tpu.memory_space<vmem>>, vector<1x8x16xf32>
      %46 = vector.shape_cast %45 : vector<1x8x16xf32> to vector<8x16xf32>
      %47 = vector.shape_cast %44 : vector<8x16xf32> to vector<1x8x16xf32>
      tpu.vector_store %arg6[%c1, %c0_41, %c0_42], %47 {strides = array<i32>} : memref<2x8x16xf32, #tpu.memory_space<vmem>>, vector<1x8x16xf32>,
    } else {
    }
    return
  }
  func.func @transform_0(%arg0: i32, %arg1: i32, %arg2: i32) -> (i32, i32, i32) {
    %c0_i32 = arith.constant 0 : i32
    %c0_i32_0 = arith.constant 0 : i32
    return %arg0, %c0_i32, %arg1 : i32, i32, i32
  }
  func.func @transform_1(%arg0: i32, %arg1: i32, %arg2: i32) -> (i32, i32, i32) {
    %c1_i32 = arith.constant 1 : i32
    %c0_i32 = arith.constant 0 : i32
    return %arg0, %c1_i32, %arg2 : i32, i32, i32
  }
  func.func @transform_2(%arg0: i32, %arg1: i32, %arg2: i32) -> (i32, i32, i32) {
    %c2_i32 = arith.constant 2 : i32
    %c0_i32 = arith.constant 0 : i32
    return %arg0, %c2_i32, %arg2 : i32, i32, i32
  }
  func.func @transform_3(%arg0: i32, %arg1: i32, %arg2: i32) -> (i32, i32, i32) {
    %c0_i32 = arith.constant 0 : i32
    %c0_i32_0 = arith.constant 0 : i32
    return %arg0, %c0_i32, %arg1 : i32, i32, i32
  }
}

</mosaic_0001>

<bundles_post_ra>
// kernel: tpu_custom_call.1
= control target key start
LH: loop header
LB: loop body
LE: loop exit
PB: predicated region body
PF: predicated region fallthrough
CT: control target
= control target key end

     0   :  { %8 = vsyncpa [#allocation10], 0  ;;  %s1642_s0 = inlined_call_operand.vmem [shape: f32[4,24,16], index: 0, kind: input, shape index: {}]   ;;  %s1643_s1 = inlined_call_operand.vmem [shape: f32[4,24,16], index: 1, kind: input, shape index: {}]   ;;  %s1644_s2 = inlined_call_operand.vmem [shape: f32[4,24,16], index: 2, kind: input, shape index: {}]   ;;  %s1645_s3 = inlined_call_operand.hbm [shape: f32[4,8,16], index: 3, kind: output, shape index: {}]  }
   0x1   :  { %10 = vsyncpa [#allocation10 + $0x1], 0  ;;  %s1434_s12 = smov 0   ;;  %s1436_s13 = smov 0  }
   0x2   :  { %s1438_s14 = smov 0   ;;  %s1440_s15 = smov 0  }
   0x3   :  { %s1442_s16 = smov 0   ;;  %s1444_s17 = smov 0  }
   0x4 LB: > { %s1170_s18 = sadd.s32 4294967295, %s1406_s17   ;;  %s1171_s19 = sadd.s32 4294967294, %s1406_s17   ;;  %s1406_s17 = sphi %s1444_s17, %s16_s17   ;;  %s1402_s16 = sphi %s1442_s16, %s1653_s16   ;;  %s1398_s15 = sphi %s1440_s15, %s1652_s15   ;;  %s1394_s14 = sphi %s1438_s14, %s1651_s14   ;;  %s1390_s13 = sphi %s1436_s13, %s1650_s13   ;;  %s1386_s12 = sphi %s1434_s12, %s1649_s12  }
   0x5   : > { %s35_s20 = sadd.s32 1, %s1402_s16  ;;  %s44_s21 = sadd.s32 1, %s1394_s14 }
   0x6   : > { %p37_p0 = scmp.ge.s32.totalorder %s35_s20, 2  ;;  %p51_p1 = scmp.ne.s32.totalorder %s1394_s14, %s1390_s13 }
   0x7   : > { %p52_p2 = scmp.eq.s32.totalorder %s1406_s17, 0  ;;  %p139_p3 = scmp.eq.s32.totalorder %s1170_s18, 1 }
   0x8   : > { %s1655_s20 = smov (%p37_p0, %s35_s20), 0  ;;  %p144_p6 = scmp.ne.s32.totalorder %s1390_s13, %s1386_s12 }
   0x9   : > { %p1473_p4 = por %p52_p2, %p51_p1  ;;  %p1477_p5 = por %p139_p3, %p51_p1 }
   0xa   : > { %s39_s24 = ssub.s32 %s1402_s16, %s1655_s20  ;;  %p145_p8 = scmp.eq.s32.totalorder %s1171_s19, 1 }
   0xb   : > { %p42_p7 = scmp.eq.s32.totalorder %s39_s24, 0  ;;  %p1173_p10 = scmp.ge.s32.totalorder %s1406_s17, 2 }
   0xc   : > { %p1488_p9 = por %p145_p8, %p144_p6 }
   0xd   : > { %s1486_s25 = scalar_select %p42_p7, %s1394_s14, %s44_s21  }
   0xe   : > { %161 = sbr.rel (%p1173_p10) target bundleno = 42 (0x2a), region = 16 }
  0x15   : > { %164 = sbr.rel (!%p1473_p4) target bundleno = 28 (0x1c), region = 20  ;;  %s166_s27 = sand.u32 (%p1473_p4), 1, %s1394_s14  }
  0x16   : > { %s1241_s28 = smul.u32 (%p1473_p4), 48, %s1402_s16  ;;  %s1174_s29 = sshll.u32 (%p1473_p4), %s166_s27, 4 }
  0x17   : > { %s168_s6 = scalar_lea.vmem (%p1473_p4), [#allocation6], %s1174_s29 }
  0x18   : > { %s173_s5 = scalar_lea.vmem (%p1473_p4), %s1642_s0, %s1241_s28 }
  0x19   : > { %v203_v0 = vld [vmem:[%s173_s5] sm:$0xff] (%p1473_p4)  ;;  %v205_v1 = vld [vmem:[%s173_s5 + $0x18] sm:$0xff] (%p1473_p4) }
  0x1a   : > { %204 = vst [vmem:[%s168_s6] sm:$0xff] (%p1473_p4), %v203_v0  ;;  %206 = vst [vmem:[%s168_s6 + $0x8] sm:$0xff] (%p1473_p4), %v205_v1 }
  0x1c PF: > { %212 = sbr.rel (!%p1473_p4) target bundleno = 35 (0x23), region = 58  ;;  %s214_s7 = sand.u32 (%p1473_p4), 1, %s1394_s14  }
  0x1d   : > { %s1179_s8 = smul.u32 (%p1473_p4), 48, %s1402_s16  ;;  %s1178_s9 = sshll.u32 (%p1473_p4), %s214_s7, 4 }
  0x1e   : > { %s216_s19 = scalar_lea.vmem (%p1473_p4), [#allocation7], %s1178_s9 }
  0x1f   : > { %s1080_s18 = scalar_lea.vmem (%p1473_p4), %s1643_s1, %s1179_s8 }
  0x20   : > { %v1180_v2 = vld [vmem:[%s1080_s18 + $0x8] sm:$0xff] (%p1473_p4)  ;;  %v1181_v3 = vld [vmem:[%s1080_s18 + $0x20] sm:$0xff] (%p1473_p4) }
  0x21   : > { %253 = vst [vmem:[%s216_s19] sm:$0xff] (%p1473_p4), %v1180_v2  ;;  %255 = vst [vmem:[%s216_s19 + $0x8] sm:$0xff] (%p1473_p4), %v1181_v3 }
  0x23 PF: > { %261 = sbr.rel (!%p1473_p4) target bundleno = 42 (0x2a), region = 96  ;;  %s263_s21 = sand.u32 (%p1473_p4), 1, %s1394_s14  }
  0x24   : > { %s1183_s24 = smul.u32 (%p1473_p4), 48, %s1402_s16  ;;  %s1182_s27 = sshll.u32 (%p1473_p4), %s263_s21, 4 }
  0x25   : > { %s265_s4 = scalar_lea.vmem (%p1473_p4), [#allocation8], %s1182_s27 }
  0x26   : > { %s1087_s30 = scalar_lea.vmem (%p1473_p4), %s1644_s2, %s1183_s24 }
  0x27   : > { %v1184_v4 = vld [vmem:[%s1087_s30 + $0x10] sm:$0xff] (%p1473_p4)  ;;  %v1185_v5 = vld [vmem:[%s1087_s30 + $0x28] sm:$0xff] (%p1473_p4) }
  0x28   : > { %302 = vst [vmem:[%s265_s4] sm:$0xff] (%p1473_p4), %v1184_v4  ;;  %304 = vst [vmem:[%s265_s4 + $0x8] sm:$0xff] (%p1473_p4), %v1185_v5 }
  0x2a PF: > { %p1186_p11 = scmp.ge.s32.totalorder %s1406_s17, 1  ;;  %p309_p12 = scmp.lt.s32.totalorder %s1406_s17, 3 }
  0x2c   : > { %p310_p13 = pnand %p1186_p11, %p309_p12 }
  0x2d   : > { %s316_s22 = sand.u32 (!%p310_p13), 1, %s1390_s13   ;;  %vm378_vm0 = vcmask (!%p310_p13), 64512   ;;  %vm369_vm1 = vcmask (!%p310_p13), 7168   ;;  %v1408_v22 = vmov (!%p310_p13), -inf   ;;  %vm634_vm2 = vcmask (!%p310_p13), 130048   ;;  %s1208_s11 = sshll.u32 (!%p310_p13), %s1398_s15, 8 }
  0x2e   : > { %313 = sbr.rel (%p310_p13) target bundleno = 1150 (0x47e), region = 134  ;;  %s1521_s5 = sshll.u32 (!%p310_p13), %s316_s22, 4  ;;  %370 = vst.msk [vmem:[#allocation2] sm:$0xff] (!%p310_p13), %vm369_vm1, %v1408_v22  ;;  %371 = vst.msk [vmem:[#allocation2 + $0x8] sm:$0xff] (!%p310_p13), %vm369_vm1, %v1408_v22  ;;  %v1409_v31 = vmov (!%p310_p13), 0.0   ;;  %v1410_v32 = vmov (!%p310_p13), 0  }
  0x2f   : > { %s318_s6 = scalar_lea.vmem (!%p310_p13), [#allocation6], %s1521_s5  ;;  %s325_s7 = scalar_lea.vmem (!%p310_p13), [#allocation7], %s1521_s5  ;;  %372 = vst.msk [vmem:[#allocation2 + $0x10] sm:$0xff] (!%p310_p13), %vm369_vm1, %v1408_v22  ;;  %373 = vst.msk [vmem:[#allocation2 + $0x18] sm:$0xff] (!%p310_p13), %vm369_vm1, %v1408_v22  ;;  %1302 = vset.pattern.permute.xlu1 (!%p310_p13), %v1410_v32 }
  0x30   : > { %v383_v6 = vld [vmem:[%s318_s6] sm:$0xff] (!%p310_p13)  ;;  %v1191_v7 = vld [vmem:[%s318_s6 + $0x8] sm:$0xff] (!%p310_p13)  ;;  %375 = vst.msk [vmem:[#allocation3 + $0x8] sm:$0xff] (!%p310_p13), %vm369_vm1, %v1409_v31  ;;  %374 = vst.msk [vmem:[#allocation3] sm:$0xff] (!%p310_p13), %vm369_vm1, %v1409_v31  ;;  %s332_s8 = scalar_lea.vmem (!%p310_p13), [#allocation8], %s1521_s5  ;;  %s360_s9 = scalar_lea.vmem (!%p310_p13), [#allocation9], %s1521_s5 }
  0x31   : > { %384 = vxpose.xlu0.b32.start.end [1/1] (short) (narrow) (!%p310_p13), %v383_v6, 16  ;;  %v459_v8 = vld [vmem:[%s325_s7] sm:$0xff] (!%p310_p13)  ;;  %v460_v9 = vld [vmem:[%s325_s7 + $0x8] sm:$0xff] (!%p310_p13)  ;;  %376 = vst.msk [vmem:[#allocation3 + $0x10] sm:$0xff] (!%p310_p13), %vm369_vm1, %v1409_v31  ;;  %377 = vst.msk [vmem:[#allocation3 + $0x18] sm:$0xff] (!%p310_p13), %vm369_vm1, %v1409_v31  ;;  %s1045_s10 = sshll.u32 (!%p310_p13), %s360_s9, 4  ;;  %s1589_s21 = scalar_lea.hbm (!%p310_p13), %s1645_s3, %s1208_s11  ;;  %s1584_s10 = int_to_ptr.vmem [resolvable:$true] %s1045_s10 }
  0x32   : > { %1221 = vmatprep.subr.mxu0 (!%p310_p13), %v459_v8  ;;  %1226 = vmatprep.subr.mxu1 (!%p310_p13), %v460_v9  ;;  %379 = vst.msk [vmem:[#allocation4] sm:$0xff] (!%p310_p13), %vm378_vm0, %v1409_v31  ;;  %380 = vst.msk [vmem:[#allocation4 + $0x8] sm:$0xff] (!%p310_p13), %vm378_vm0, %v1409_v31  ;;  %v461_v49 = vld [vmem:[%s332_s8] sm:$0xff] (!%p310_p13)  ;;  %v462_v50 = vld [vmem:[%s332_s8 + $0x8] sm:$0xff] (!%p310_p13)  ;;  %s1595_s24 = scalar_lea.sflag (!%p310_p13), [#allocation10], %s316_s22  ;;  %s1328_s15 = scalar_lea.vmem (!%p310_p13), %s1584_s10, 256 }
  0x33   : > { %1222 = vmatpush3.msra.mxu0 (!%p310_p13), %v459_v8  ;;  %1227 = vmatpush3.msra.mxu1 (!%p310_p13), %v460_v9  ;;  %381 = vst.msk [vmem:[#allocation4 + $0x10] sm:$0xff] (!%p310_p13), %vm378_vm0, %v1409_v31  ;;  %382 = vst.msk [vmem:[#allocation4 + $0x18] sm:$0xff] (!%p310_p13), %vm378_vm0, %v1409_v31  ;;  %p1329_p0 = scmp.ne.s32.totalorder (!%p310_p13), %s1584_s10, %s1328_s15  ;;  %s1411_s27 = smov (!%p310_p13), [#allocation9]  }
  0x34   : > { %1231 = vmatprep.subr.msk.mxu0 (!%p310_p13), %vm634_vm2, %v461_v49  ;;  %1236 = vmatprep.subr.msk.mxu1 (!%p310_p13), %vm634_vm2, %v462_v50  ;;  %s1332_s28 = sshll.u32 (!%p310_p13), %s1411_s27, 4  ;;  %s1333_s28 = int_to_ptr.vmem [resolvable:$false] %s1332_s28 }
  0x35   : > { %v1552_v33 = vld [vmem:[#allocation2] sm:$0xff]  ;;  %v631_v44 = vld [vmem:[#allocation2 + $0x8] sm:$0xff]  ;;  %p1330_p1 = pnand %p1329_p0, %p1477_p5  ;;  %s1334_s29 = scalar_lea.vmem %s1333_s28, 512 }
  0x36   : > { %422 = vxpose.xlu0.b32.start.end [1/1] (short) (narrow) %v1191_v7, 16  ;;  %v633_v37 = vld [vmem:[#allocation2 + $0x18] sm:$0xff]  ;;  %v632_v38 = vld [vmem:[#allocation2 + $0x10] sm:$0xff]  ;;  %p1335_p3 = scmp.lt.s32.totalorder %s1584_s10, %s1333_s28  ;;  %p1336_p4 = scmp.lt.s32.totalorder %s1334_s29, %s1328_s15 }
  0x37   : > { %v688_v7 = vld [vmem:[#allocation3 + $0x8] sm:$0xff]  ;;  %p1331_p2 = pneg %p1330_p1 }
  0x38   : > { %p1337_p6 = por %p1336_p4, %p1335_p3 }
  0x3a   : > { %p1338_p7 = pnand %p1337_p6, %p1331_p2 }
  0x5f   : > { %1303 = vset.pattern.permute.xlu0 %v1410_v32 }
  0xb1   : > { %v400_v10 = vpop.trf.xlu0 }
  0xb2   : > { %v416_v11 = vmul.f32 0.5100697, %v400_v10  ;;  %v687_v10 = vld [vmem:[#allocation3] sm:$0xff] }
  0xb4   : > { %418 = vst.msk [vmem:[#allocation5] sm:$0xff] %vm378_vm0, %v416_v11 }
  0xb5   : > { %v401_v12 = vpop.trf.xlu0 }
  0xb6   : > { %v417_v13 = vmul.f32 0.5100697, %v401_v12 }
  0xb8   : > { %419 = vst.msk [vmem:[#allocation5 + $0x8] sm:$0xff] %vm378_vm0, %v417_v13 }
  0xb9   : > { %v438_v14 = vpop.trf.xlu0 }
  0xba   : > { %v454_v15 = vmul.f32 0.5100697, %v438_v14  ;;  %v689_v14 = vld [vmem:[#allocation3 + $0x10] sm:$0xff] }
  0xbb   : > { %v463_v16 = vld [vmem:[#allocation5] sm:$0xff] }
  0xbc   : > { %457 = vst.msk [vmem:[#allocation5 + $0x10] sm:$0xff] %vm378_vm0, %v454_v15  ;;  %1223 = vmatprep.mubr.msk.f32.mxu0 %vm378_vm0, %v463_v16 }
  0xbd   : > { %v439_v17 = vpop.trf.xlu0 }
  0xbe   : > { %v455_v18 = vmul.f32 0.5100697, %v439_v17 }
  0xbf   : > { %v464_v19 = vld [vmem:[#allocation5 + $0x8] sm:$0xff] }
  0xc0   : > { %458 = vst.msk [vmem:[#allocation5 + $0x18] sm:$0xff] %vm378_vm0, %v455_v18  ;;  %1224 = vmatmul.mubr.msk.f32.vlgmr.msra.gmra.mrb[0].mxu0 %vm378_vm0, %v464_v19  ;;  %v690_v18 = vld [vmem:[#allocation3 + $0x18] sm:$0xff] }
  0xc1   : > { %1232 = vmatpush3.xpose.msk.msra.mxu0 %vm634_vm2, %v461_v49 }
  0xc3   : > { %v465_v20 = vld [vmem:[#allocation5 + $0x10] sm:$0xff] }
  0xc4   : > { %1228 = vmatprep.mubr.msk.f32.mxu1 %vm378_vm0, %v465_v20 }
  0xc7   : > { %v466_v21 = vld [vmem:[#allocation5 + $0x18] sm:$0xff] }
  0xc8   : > { %1229 = vmatmul.mubr.msk.f32.vlgmr.msra.gmra.mrb[0].mxu1 %vm378_vm0, %v466_v21 }
  0xc9   : > { %1237 = vmatpush3.xpose.msk.msra.mxu1 %vm634_vm2, %v462_v50 }
 0x193   : > { %v1225_v23 = vpop.f32.mrb[0].mxu0 }
 0x194   : > { %v540_v24 = vpop.f32.mrb[1].mxu0  ;;  %v638_v30 = vsel %vm634_vm2, %v1225_v23, -inf }
 0x195   : > { %v635_v25 = vsel %vm634_vm2, %v540_v24, -inf }
 0x196   : > { %636 = vmax.xlane.f32.xlu1 %v635_v25 }
 0x19b   : > { %v1538_v26 = vpop.f32.mrb[0].mxu1 }
 0x19c   : > { %v621_v27 = vpop.f32.mrb[1].mxu1  ;;  %v644_v28 = vsel %vm634_vm2, %v1538_v26, -inf }
 0x19d   : > { %645 = vmax.xlane.f32.xlu0 %v644_v28  ;;  %v641_v29 = vsel %vm634_vm2, %v621_v27, -inf  ;;  %v885_v28 = vld [vmem:[#allocation4 + $0x8] sm:$0xff] }
 0x19e   : > { %642 = vmax.xlane.f32.xlu1 %v641_v29 }
 0x1a2   : > { %639 = vmax.xlane.f32.xlu1 %v638_v30  ;;  %v884_v30 = vld [vmem:[#allocation4] sm:$0xff] }
 0x223   : > { %v637_v34 = vpop.xlane.xlu1 %636 }
 0x224   : > { %v647_v35 = vmax.f32 %v1552_v33, %v637_v34 }
 0x226   : > { %v651_v36 = vsub.f32 %v1552_v33, %v647_v35  ;;  %920 = vst.msk [vmem:[#allocation2] sm:$0xff] %vm369_vm1, %v647_v35 }
 0x22a   : > { %v646_v39 = vpop.xlane.xlu0 %645 }
 0x22b   : > { %v650_v40 = vmax.f32 %v633_v37, %v646_v39  ;;  %v643_v41 = vpop.xlane.xlu1 %642 }
 0x22c   : > { %v649_v42 = vmax.f32 %v632_v38, %v643_v41 }
 0x22d   : > { %v654_v43 = vsub.f32 %v633_v37, %v650_v40  ;;  %923 = vst.msk [vmem:[#allocation2 + $0x18] sm:$0xff] %vm369_vm1, %v650_v40 }
 0x22e   : > { %v653_v45 = vsub.f32 %v632_v38, %v649_v42  ;;  %922 = vst.msk [vmem:[#allocation2 + $0x10] sm:$0xff] %vm369_vm1, %v649_v42  ;;  %v887_v38 = vld [vmem:[#allocation4 + $0x18] sm:$0xff] }
 0x22f   : > { %v640_v46 = vpop.xlane.xlu1 %639 }
 0x230   : > { %v648_v47 = vmax.f32 %v631_v44, %v640_v46 }
 0x232   : > { %v652_v48 = vsub.f32 %v631_v44, %v648_v47  ;;  %921 = vst.msk [vmem:[#allocation2 + $0x8] sm:$0xff] %vm369_vm1, %v648_v47  ;;  %666 = vperm.xlu1 %1302, %v648_v47  }
 0x236   : > { %661 = vperm.xlu1 %1302, %v647_v35  }
 0x23a   : > { %671 = vperm.xlu1 %1302, %v649_v42  }
 0x23e   : > { %676 = vperm.xlu1 %1302, %v650_v40   ;;  %v886_v40 = vld [vmem:[#allocation4 + $0x10] sm:$0xff] }
 0x2b1   : > { %v667_v51 = vpop.permute.xlu1 %666 }
 0x2b2   : > { %v680_v52 = vsub.f32 %v1225_v23, %v667_v51 }
 0x2b4   : > { %1304 = vpow2.f32 %v680_v52 }
 0x2b5   : > { %v662_v53 = vpop.permute.xlu1 %661 }
 0x2b6   : > { %v679_v54 = vsub.f32 %v540_v24, %v662_v53 }
 0x2b8   : > { %1306 = vpow2.f32 %v679_v54 }
 0x2b9   : > { %v672_v55 = vpop.permute.xlu1 %671 }
 0x2ba   : > { %v681_v56 = vsub.f32 %v621_v27, %v672_v55 }
 0x2bc   : > { %1308 = vpow2.f32 %v681_v56 }
 0x2bd   : > { %v677_v57 = vpop.permute.xlu1 %676 }
 0x2be   : > { %v1305_v58 = vpop.eup %1304  ;;  %v682_v59 = vsub.f32 %v1538_v26, %v677_v57 }
 0x2bf   : > { %v698_v60 = vsel %vm634_vm2, %v1305_v58, 0.0 }
 0x2c0   : > { %1310 = vpow2.f32 %v682_v59  ;;  %699 = vadd.xlane.f32.xlu0 %v698_v60 }
 0x2c1   : > { %1312 = vpow2.f32 %v653_v45 }
 0x2c2   : > { %v1307_v61 = vpop.eup %1306  ;;  %1314 = vpow2.f32 %v652_v48 }
 0x2c3   : > { %1233 = vmatprep.mubr.msk.f32.mxu0 %vm634_vm2, %v1307_v61  ;;  %v695_v62 = vsel %vm634_vm2, %v1307_v61, 0.0  ;;  %1316 = vpow2.f32 %v654_v43 }
 0x2c4   : > { %1234 = vmatmul.mubr.msk.f32.vlgmr.msra.gmra.mrb[2].mxu0 %vm634_vm2, %v1305_v58  ;;  %696 = vadd.xlane.f32.xlu1 %v695_v62  ;;  %1318 = vpow2.f32 %v651_v36 }
 0x2c6   : > { %v1309_v63 = vpop.eup %1308 }
 0x2c7   : > { %1238 = vmatprep.mubr.msk.f32.mxu1 %vm634_vm2, %v1309_v63  ;;  %v701_v0 = vsel %vm634_vm2, %v1309_v63, 0.0 }
 0x2c8   : > { %702 = vadd.xlane.f32.xlu0 %v701_v0 }
 0x2ca   : > { %v1311_v1 = vpop.eup %1310 }
 0x2cb   : > { %1239 = vmatmul.mubr.msk.f32.vlgmr.msra.gmra.mrb[2].mxu1 %vm634_vm2, %v1311_v1  ;;  %v704_v2 = vsel %vm634_vm2, %v1311_v1, 0.0  ;;  %v1313_v3 = vpop.eup %1312 }
 0x2cc   : > { %705 = vadd.xlane.f32.xlu0 %v704_v2  ;;  %v1315_v4 = vpop.eup %1314  ;;  %v693_v16 = vmul.f32 %v1313_v3, %v689_v14 }
 0x2cd   : > { %v1317_v5 = vpop.eup %1316  ;;  %v692_v8 = vmul.f32 %v1315_v4, %v688_v7 }
 0x2ce   : > { %v1319_v6 = vpop.eup %1318  ;;  %v694_v20 = vmul.f32 %v1317_v5, %v690_v18 }
 0x2cf   : > { %v691_v12 = vmul.f32 %v1319_v6, %v687_v10 }
 0x2d5   : > { %900 = vperm.xlu1 %1302, %v1313_v3  }
 0x2d9   : > { %895 = vperm.xlu1 %1302, %v1315_v4  }
 0x2dd   : > { %905 = vperm.xlu1 %1302, %v1317_v5  }
 0x2e2   : > { %890 = vperm.xlu0 %1303, %v1319_v6  }
 0x34d   : > { %v700_v9 = vpop.xlane.xlu0 %699 }
 0x34e   : > { %v708_v11 = vadd.f32 %v700_v9, %v692_v8 }
 0x350   : > { %713 = vst.msk [vmem:[#allocation3 + $0x8] sm:$0xff] %vm369_vm1, %v708_v11 }
 0x351   : > { %v697_v13 = vpop.xlane.xlu1 %696 }
 0x352   : > { %v707_v15 = vadd.f32 %v697_v13, %v691_v12 }
 0x354   : > { %712 = vst.msk [vmem:[#allocation3] sm:$0xff] %vm369_vm1, %v707_v15 }
 0x355   : > { %v703_v17 = vpop.xlane.xlu0 %702  ;;  %v901_v27 = vpop.permute.xlu1 %900 }
 0x356   : > { %v709_v19 = vadd.f32 %v703_v17, %v693_v16  ;;  %v910_v42 = vmul.f32 %v901_v27, %v886_v40 }
 0x357   : > { %v932_v26 = vld [vmem:[#allocation3 + $0x8] sm:$0xff] }
 0x358   : > { %714 = vst.msk [vmem:[#allocation3 + $0x10] sm:$0xff] %vm369_vm1, %v709_v19 }
 0x359   : > { %v706_v21 = vpop.xlane.xlu0 %705  ;;  %v896_v29 = vpop.permute.xlu1 %895 }
 0x35a   : > { %v710_v22 = vadd.f32 %v706_v21, %v694_v20  ;;  %v909_v32 = vmul.f32 %v896_v29, %v885_v28 }
 0x35b   : > { %v931_v23 = vld [vmem:[#allocation3] sm:$0xff] }
 0x35c   : > { %715 = vst.msk [vmem:[#allocation3 + $0x18] sm:$0xff] %vm369_vm1, %v710_v22  ;;  %937 = vperm.xlu1 %1302, %v931_v23  }
 0x35d   : > { %v906_v39 = vpop.permute.xlu1 %905 }
 0x35e   : > { %v911_v41 = vmul.f32 %v906_v39, %v887_v38 }
 0x35f   : > { %v933_v24 = vld [vmem:[#allocation3 + $0x10] sm:$0xff] }
 0x360   : > { %947 = vperm.xlu1 %1302, %v933_v24  }
 0x361   : > { %v891_v31 = vpop.permute.xlu0 %890 }
 0x362   : > { %v908_v33 = vmul.f32 %v891_v31, %v884_v30 }
 0x363   : > { %v934_v25 = vld [vmem:[#allocation3 + $0x18] sm:$0xff] }
 0x364   : > { %952 = vperm.xlu0 %1303, %v934_v25   ;;  %942 = vperm.xlu1 %1302, %v932_v26  }
 0x397   : > { %v1235_v34 = vpop.f32.mrb[2].mxu0 }
 0x398   : > { %v913_v35 = vadd.f32 %v1235_v34, %v909_v32  ;;  %v791_v36 = vpop.f32.mrb[3].mxu0 }
 0x399   : > { %v912_v37 = vadd.f32 %v908_v33, %v791_v36 }
 0x39a   : > { %917 = vst.msk [vmem:[#allocation4 + $0x8] sm:$0xff] %vm378_vm0, %v913_v35 }
 0x39b   : > { %916 = vst.msk [vmem:[#allocation4] sm:$0xff] %vm378_vm0, %v912_v37 }
 0x39e   : > { %v1240_v43 = vpop.f32.mrb[2].mxu1 }
 0x39f   : > { %v915_v44 = vadd.f32 %v1240_v43, %v911_v41  ;;  %v875_v45 = vpop.f32.mrb[3].mxu1 }
 0x3a0   : > { %v914_v46 = vadd.f32 %v910_v42, %v875_v45 }
 0x3a1   : > { %919 = vst.msk [vmem:[#allocation4 + $0x18] sm:$0xff] %vm378_vm0, %v915_v44  ;;  %v928_v61 = vld [vmem:[#allocation4 + $0x8] sm:$0xff] }
 0x3a2   : > { %918 = vst.msk [vmem:[#allocation4 + $0x10] sm:$0xff] %vm378_vm0, %v914_v46  ;;  %v927_v52 = vld [vmem:[#allocation4] sm:$0xff] }
 0x3a8   : > { %v930_v58 = vld [vmem:[#allocation4 + $0x18] sm:$0xff] }
 0x3a9   : > { %v929_v55 = vld [vmem:[#allocation4 + $0x10] sm:$0xff] }
 0x3db   : > { %v938_v47 = vpop.permute.xlu1 %937 }
 0x3dc   : > { %1320 = vrcp.f32 %v938_v47 }
 0x3df   : > { %v948_v48 = vpop.permute.xlu1 %947 }
 0x3e0   : > { %1322 = vrcp.f32 %v948_v48 }
 0x3e3   : > { %v953_v49 = vpop.permute.xlu0 %952  ;;  %v943_v50 = vpop.permute.xlu1 %942 }
 0x3e4   : > { %1324 = vrcp.f32 %v953_v49 }
 0x3e5   : > { %1326 = vrcp.f32 %v943_v50 }
 0x3e6   : > { %v1321_v51 = vpop.eup %1320 }
 0x3e7   : > { %v956_v53 = vmul.f32 %v1321_v51, %v927_v52 }
 0x3e9   : > { %963 = vxpose.xlu1.b32.start [1/2] (short) (narrow) %v956_v53, 8 }
 0x3ea   : > { %v1323_v54 = vpop.eup %1322 }
 0x3eb   : > { %v960_v56 = vmul.f32 %v1323_v54, %v929_v55 }
 0x3ed   : > { %996 = vxpose.xlu0.b32.start [1/2] (short) (narrow) %v960_v56, 8 }
 0x3ee   : > { %v1325_v57 = vpop.eup %1324 }
 0x3ef   : > { %v1327_v59 = vpop.eup %1326  ;;  %v962_v60 = vmul.f32 %v1325_v57, %v930_v58 }
 0x3f0   : > { %v958_v62 = vmul.f32 %v1327_v59, %v928_v61 }
 0x3f1   : > { %997 = vxpose.xlu0.b32.end [2/2] (short) (narrow) %v962_v60, 8 }
 0x3f2   : > { %964 = vxpose.xlu1.b32.end [2/2] (short) (narrow) %v958_v62, 8 }
 0x46d   : > { %v1012_v63 = vpop.trf.xlu0 }
 0x46e   : > { %1202 = vst.msk [vmem:[%s360_s9 + $0x8] sm:$0xff] %vm634_vm2, %v1012_v63  ;;  %v979_v0 = vpop.trf.xlu1 }
 0x46f   : > { %995 = vst.msk [vmem:[%s360_s9] sm:$0xff] %vm634_vm2, %v979_v0 }
 0x470   : > { %1341 = shalt.err (!%p1338_p7)
}
 0x471   : > { %s1342_s30 = scalar_lea.hbm %s1589_s21, 256  ;;  %s1346_s5 = scalar_lea.hbm %s1645_s3, 512 }
 0x472   : > { %p1343_p8 = scmp.ne.s32.totalorder %s1589_s21, %s1342_s30  ;;  %p1347_p13 = scmp.lt.u32.totalorder %s1589_s21, %s1645_s3 }
 0x473   : > { %p1348_p0 = scmp.lt.u32.totalorder %s1346_s5, %s1342_s30  ;;  %p1350_p2 = scmp.lt.u32.totalorder %s1342_s30, %s1589_s21 }
 0x474   : > { %p1344_p11 = pnand %p1343_p8, %p1477_p5 }
 0x475   : > { %p1349_p1 = por %p1348_p0, %p1347_p13 }
 0x476   : > { %p1345_p12 = pneg %p1344_p11 }
 0x477   : > { %p1351_p3 = por %p1350_p2, %p1349_p1 }
 0x479   : > { %p1352_p4 = pnand %p1351_p3, %p1345_p12 }
 0x47b   : > { %1355 = shalt.err (!%p1352_p4)
}
 0x47c   : > { %s1412_s8 = smov 128   ;;  %s1413_s9 = smov 8  }
 0x47d   : > { %1242 = dma.vmem_to_hbm [thread:$0]  (%p1477_p5), %s1584_s10, 256, %s1589_s21, %s1595_s24, %s1412_s8, %s1412_s8, %s1413_s9  }
 0x47e PF: > { %s1060_s11 = sand.u32 1, %s1386_s12   ;;  %p1245_p6 = pnand %p1173_p10, %p1488_p9 }
 0x47f   : > { %s1061_s18 = scalar_lea.sflag [#allocation10], %s1060_s11 }
 0x480   : > { %1381 = dma.done.wait (!%p1245_p6), %s1061_s18, 256  }
 0x481   : > { %1383 = vsyncadd (!%p1245_p6), %s1061_s18, 4294967040  ;;  %s16_s17 = sadd.s32 1, %s1406_s17   ;;  %s1649_s12 = smov %s1390_s13 }
 0x482   : > { %p13_p7 = scmp.ge.s32.totalorder %s16_s17, 4   ;;  %s1650_s13 = smov %s1394_s14 }
 0x483   : > { %s1651_s14 = smov %s1486_s25  ;;  %s1652_s15 = smov %s1402_s16 }
 0x484   : > { %s1653_s16 = smov %s1655_s20  ;;  %15 = sbr.rel (!%p13_p7) target bundleno = 4 (0x4), region = 213 }
 0x48b   :  { %1066 = vsyncpa [#allocation10], 1 }
 0x48c   :  { %1068 = vsyncpa [#allocation10 + $0x1], 1 }

</bundles_post_ra>
